<compile_context>
chip_gen: v6e
topology: v6e:2x2x1
jax: 0.10.0
libtpu: 0.0.40
codegen_flags: <defaults>
</compile_context>

<pallas_src>
import functools

import jax
import jax.numpy as jnp
from jax.experimental import pallas as pl
from jax.experimental.pallas import tpu as pltpu

EPS = 1e-5      # BatchNorm1d default eps
SLOPE = 0.01    # LeakyReLU default negative_slope
KSIZE = 16
STRIDE = 2
PAD = 7
HALO = 4        # conv-transpose taps reach 4 input positions on either side


def _round_up(v, m):
    return (v + m - 1) // m * m


def _conv_stats_kernel(x_ref, w_ref, y_ref, stats_ref):
    """One (batch, L-tile) step: transposed conv as ONE MXU matmul + per-tile BN statistics.

    x_ref:     (1, 1, tl + 2*HALO, C_in_p)   haloed input window (auto double-buffered)
    w_ref:     (8*C_in_p, 2*C_out_p)         [even taps | odd taps], resident
    y_ref:     (1, tl, 2*C_out_p)            pre-BN output tile, parity folded into channels
    stats_ref: (1, 1, 2, 2*C_out_p)          row 0 = per-(parity,channel) sum, row 1 = sumsq
    """
    tl = y_ref.shape[1]
    cp = w_ref.shape[1] // 2

    xw = x_ref[0, 0]                                          # (tl + 8, C_in_p)
    # Shared im2col buffer: column block j = xw[7-j : 8-j+tl]  ->  (tl+1, 8*C_in_p).
    # Even outputs t=2M use rows [0:tl] (x[M+3-j], taps k=2j+1); odd outputs t=2M+1 use
    # rows [1:tl+1] (x[M+4-j], taps k=2j).  One buffer instead of two -> half the shifts.
    lhs = jnp.concatenate([xw[7 - j: 8 - j + tl, :] for j in range(8)], axis=1)

    # Single matmul, N-dim = 2*C_out_p (even | odd).  f32 accumulation.
    y2 = jnp.dot(lhs, w_ref[...], preferred_element_type=jnp.float32)     # (tl+1, 2*cp)
    yfull = jnp.concatenate([y2[0:tl, :cp], y2[1:tl + 1, cp:]], axis=1)   # (tl, 2*cp) f32
    # ConvTranspose bias omitted on purpose: training-mode BatchNorm cancels it exactly.

    # Lane-dense pre-BN tile (bf16 storage when compute_dtype is bf16; stats stay f32 below).
    y_ref[0, :, :] = yfull.astype(y_ref.dtype)

    ssum = jnp.sum(yfull, axis=0, keepdims=True)              # (1, 2*cp) f32
    ssq = jnp.sum(yfull * yfull, axis=0, keepdims=True)
    stats_ref[0, 0, :, :] = jnp.concatenate([ssum, ssq], axis=0)


def upsample_batchnorm(x, weight, bias, gamma, beta, *, tl=512,
                       compute_dtype=jnp.bfloat16,
                       vmem_limit_bytes=48 * 1024 * 1024):
    """x: (N, C_in, L) f32; weight: (C_in, C_out, 16) [PyTorch ConvTranspose1d layout].

    Returns (N, C_out, 2*L) f32 matching the PyTorch module forward (training-mode BN).
    `bias` is accepted for API parity but unused: training-mode BatchNorm cancels it exactly.
    `tl` is the requested L-tile size; it is auto-shrunk to the largest divisor of L that
    fits the VMEM budget.  Raise vmem_limit_bytes (to ~96 MiB) on v5e/v6e for big channels.
    """
    del bias  # cancelled exactly by batch-statistics BatchNorm
    N, C_in, L = x.shape
    C_out = weight.shape[1]
    T = STRIDE * L

    # Contraction dim K = 8*C_in_p must be 128-aligned; use 32-alignment (K multiple of 256,
    # full 256-wide MXU fill on v6e/v7x) unless C_in is tiny and the padding would dominate.
    c_in_align = 32 if C_in > 16 else 16
    C_in_p = _round_up(C_in, c_in_align)
    C_out_p = _round_up(C_out, 128)        # lane-dense stores; matmul N-dim = 2*C_out_p >= 256
    K = 8 * C_in_p

    cdt_bytes = jnp.finfo(compute_dtype).bits // 8

    def vmem_estimate(t):
        win = 2 * (t + 2 * HALO) * C_in_p * cdt_bytes          # x window (double buffered)
        wgt = 2 * K * 2 * C_out_p * cdt_bytes                  # resident weights (2 buffers)
        yout = 2 * t * 2 * C_out_p * cdt_bytes                 # y tile (double buffered)
        st = 2 * 2 * 2 * C_out_p * 4                           # stats tile
        tmp = (t + 1) * K * cdt_bytes + 2 * (t + 1) * 2 * C_out_p * 4   # lhs + f32 temps
        return win + wgt + yout + st + tmp

    # Pick the largest legal L-tile (divisor of L, multiple of 8 or == L) within budget.
    budget = int(0.8 * vmem_limit_bytes)
    tl_req = max(int(tl), 1)
    cands = sorted({d for d in range(8, L + 1, 8) if L % d == 0} | {L})
    affordable = [c for c in cands if c <= tl_req and vmem_estimate(c) <= budget]
    if affordable:
        tl = max(affordable)
    else:
        within = [c for c in cands if c <= tl_req]
        tl = max(within) if within else min(cands)
    nL = L // tl

    # ---- layout glue (wrapper-side data movement only; no 8x im2col inflation in HBM) ----
    x_cl = jnp.transpose(x, (0, 2, 1)).astype(jnp.float32)                    # (N, L, C_in)
    x_full = jnp.pad(x_cl, ((0, 0), (HALO, HALO), (0, C_in_p - C_in)))        # (N, L+8, C_in_p)
    # Pre-cut haloed windows (N, nL, tl+8, C_in_p): only 8 duplicated rows per tile, but the
    # standard BlockSpec below auto double-buffers the x DMA (no exposed halo copy in-kernel).
    if nL == 1:
        x_win = x_full[:, None, :, :]
    else:
        body = x_full[:, :L, :].reshape(N, nL, tl, C_in_p)
        tail = x_full[:, tl:, :]
        tail = jnp.pad(tail, ((0, 0), (0, nL * tl - tail.shape[1]), (0, 0)))
        tail = tail.reshape(N, nL, tl, C_in_p)[:, :, :2 * HALO, :]
        x_win = jnp.concatenate([body, tail], axis=2)
    x_win = x_win.astype(compute_dtype)

    w_pad = jnp.zeros((C_in_p, C_out_p, KSIZE), jnp.float32)
    w_pad = w_pad.at[:C_in, :C_out, :].set(weight.astype(jnp.float32))
    w_e = jnp.transpose(w_pad[:, :, 1::2], (2, 0, 1)).reshape(K, C_out_p)     # taps k = 2j+1
    w_o = jnp.transpose(w_pad[:, :, 0::2], (2, 0, 1)).reshape(K, C_out_p)     # taps k = 2j
    w2 = jnp.concatenate([w_e, w_o], axis=1).astype(compute_dtype)            # (K, 2*C_out_p)

    # ---- phase 1: tiled transposed conv + per-tile statistics (Pallas) ----
    y, stats = pl.pallas_call(
        _conv_stats_kernel,
        grid=(N, nL),
        in_specs=[
            pl.BlockSpec((1, 1, tl + 2 * HALO, C_in_p), lambda n, l: (n, l, 0, 0)),
            pl.BlockSpec((K, 2 * C_out_p), lambda n, l: (0, 0)),      # weights stay resident
        ],
        out_specs=[
            pl.BlockSpec((1, tl, 2 * C_out_p), lambda n, l: (n, l, 0)),
            pl.BlockSpec((1, 1, 2, 2 * C_out_p), lambda n, l: (n, l, 0, 0)),
        ],
        out_shape=[
            jax.ShapeDtypeStruct((N, L, 2 * C_out_p), compute_dtype),          # pre-BN y
            jax.ShapeDtypeStruct((N, nL, 2, 2 * C_out_p), jnp.float32),        # [sum; sumsq]
        ],
        compiler_params=pltpu.CompilerParams(
            dimension_semantics=("parallel", "parallel"),
            vmem_limit_bytes=vmem_limit_bytes),
    )(x_win, w2)

    # ---- tiny per-channel reduction (f32): batch statistics -> scale / shift ----
    cnt = jnp.float32(N * T)
    folded = jnp.sum(stats, axis=(0, 1))                       # (2, 2*C_out_p)
    s = folded[0, :C_out_p] + folded[0, C_out_p:]              # fold even/odd parities
    q = folded[1, :C_out_p] + folded[1, C_out_p:]
    mean = s / cnt
    var = q / cnt - mean * mean                                # biased variance (training mode)
    inv = 1.0 / jnp.sqrt(var + EPS)
    gamma_p = jnp.pad(gamma.astype(jnp.float32), (0, C_out_p - C_out))
    beta_p = jnp.pad(beta.astype(jnp.float32), (0, C_out_p - C_out))
    scale = gamma_p * inv
    shift = beta_p - mean * scale

    # ---- fused epilogue (XLA): scale/shift + LeakyReLU + channel slice + time interleave +
    # transpose, all in one pass over y (replaces the old Pallas phase 2 + reshape/transpose).
    y4 = y.reshape(N, L, 2, C_out_p).astype(jnp.float32)       # [n, m, parity, channel]
    z = y4 * scale + shift
    z = jnp.where(z >= 0.0, z, SLOPE * z)
    out = z[:, :, :, :C_out].reshape(N, T, C_out)              # t = 2m + parity
    return jnp.transpose(out, (0, 2, 1))                       # (N, C_out, T)


def reference(x, weight, bias, gamma, beta):
    """Pure-JAX reference of the PyTorch forward pass (training-mode BN)."""
    N, C_in, L = x.shape
    C_out = weight.shape[1]
    T = STRIDE * L
    y = jnp.zeros((N, C_out, T), jnp.float32)
    for l in range(L):
        for k in range(KSIZE):
            t = STRIDE * l - PAD + k
            if 0 <= t < T:
                y = y.at[:, :, t].add(jnp.einsum('nc,cd->nd', x[:, :, l], weight[:, :, k]))
    y = y + bias[None, :, None]
    mean = jnp.mean(y, axis=(0, 2), keepdims=True)
    var = jnp.mean((y - mean) ** 2, axis=(0, 2), keepdims=True)
    yh = (y - mean) / jnp.sqrt(var + EPS) * gamma[None, :, None] + beta[None, :, None]
    return jnp.where(yh >= 0, yh, SLOPE * yh)


if __name__ == "__main__":
    N, C_IN, C_OUT, L = 2, 4, 8, 16

    key = jax.random.PRNGKey(0)
    kx, kw, kb, kg, kbe = jax.random.split(key, 5)
    x = jax.random.normal(kx, (N, C_IN, L), jnp.float32)
    weight = jax.random.normal(kw, (C_IN, C_OUT, KSIZE), jnp.float32) * 0.1
    bias = jax.random.normal(kb, (C_OUT,), jnp.float32) * 0.1
    gamma = 1.0 + 0.1 * jax.random.normal(kg, (C_OUT,), jnp.float32)
    beta = 0.1 * jax.random.normal(kbe, (C_OUT,), jnp.float32)

    ref = reference(x, weight, bias, gamma, beta)

    # f32 matmul path (tolerance allows for MXU f32-via-bf16-pass rounding).
    run_f32 = jax.jit(functools.partial(upsample_batchnorm, compute_dtype=jnp.float32))
    out_f32 = jax.block_until_ready(run_f32(x, weight, bias, gamma, beta))
    assert out_f32.shape == (N, C_OUT, 2 * L), out_f32.shape
    if not jnp.allclose(out_f32, ref, atol=1e-2, rtol=1e-2):
        raise AssertionError("f32 Pallas kernel output does not match reference")

    # bf16 matmul inputs + bf16 y storage (f32 accumulation and f32 BN stats): looser check.
    run_bf16 = jax.jit(functools.partial(upsample_batchnorm, compute_dtype=jnp.bfloat16))
    out_bf16 = jax.block_until_ready(run_bf16(x, weight, bias, gamma, beta))
    assert out_bf16.shape == (N, C_OUT, 2 * L), out_bf16.shape
    if not jnp.allclose(out_bf16, ref, atol=6e-2, rtol=6e-2):
        raise AssertionError("bf16 Pallas kernel output does not match reference")

    print("KERNEL_OK")
</pallas_src>

<mosaic_0001>
module attributes {stable_mosaic.version = 11 : i64} {
  func.func @_conv_stats_kernel(%arg0: i32, %arg1: i32, %arg2: memref<1x1x24x16xf32, #tpu.memory_space<vmem>>, %arg3: memref<128x256xf32, #tpu.memory_space<vmem>>, %arg4: memref<1x16x256xf32, #tpu.memory_space<vmem>>, %arg5: memref<1x1x2x256xf32, #tpu.memory_space<vmem>>) attributes {dimension_semantics = [#tpu.dimension_semantics<parallel>, #tpu.dimension_semantics<parallel>], iteration_bounds = array<i64: 2, 1>, scalar_prefetch = 0 : i64, scratch_operands = 0 : i64, tpu.core_type = #tpu.core_type<tc>, window_params = [{transform_indices = @transform_0, window_bounds = array<i64: 1, 1, 24, 16>}, {pipeline_mode = #tpu.pipeline_mode<synchronous>, transform_indices = @transform_1, window_bounds = array<i64: 128, 256>}, {transform_indices = @transform_2, window_bounds = array<i64: 1, 16, 256>}, {transform_indices = @transform_3, window_bounds = array<i64: 1, 1, 2, 256>}]} {
    %c0 = arith.constant 0 : index
    %c0_0 = arith.constant 0 : index
    %c0_1 = arith.constant 0 : index
    %c0_2 = arith.constant 0 : index
    %0 = vector.load %arg2[%c0, %c0_0, %c0_1, %c0_2] : memref<1x1x24x16xf32, #tpu.memory_space<vmem>>, vector<1x1x24x16xf32>
    %1 = vector.shape_cast %0 : vector<1x1x24x16xf32> to vector<24x16xf32>
    %2 = vector.extract_strided_slice %1 {offsets = [7, 0], sizes = [17, 16], strides = [1, 1]} : vector<24x16xf32> to vector<17x16xf32>
    %3 = vector.extract_strided_slice %1 {offsets = [6, 0], sizes = [17, 16], strides = [1, 1]} : vector<24x16xf32> to vector<17x16xf32>
    %4 = vector.extract_strided_slice %1 {offsets = [5, 0], sizes = [17, 16], strides = [1, 1]} : vector<24x16xf32> to vector<17x16xf32>
    %5 = vector.extract_strided_slice %1 {offsets = [4, 0], sizes = [17, 16], strides = [1, 1]} : vector<24x16xf32> to vector<17x16xf32>
    %6 = vector.extract_strided_slice %1 {offsets = [3, 0], sizes = [17, 16], strides = [1, 1]} : vector<24x16xf32> to vector<17x16xf32>
    %7 = vector.extract_strided_slice %1 {offsets = [2, 0], sizes = [17, 16], strides = [1, 1]} : vector<24x16xf32> to vector<17x16xf32>
    %8 = vector.extract_strided_slice %1 {offsets = [1, 0], sizes = [17, 16], strides = [1, 1]} : vector<24x16xf32> to vector<17x16xf32>
    %9 = vector.extract_strided_slice %1 {offsets = [0, 0], sizes = [17, 16], strides = [1, 1]} : vector<24x16xf32> to vector<17x16xf32>
    %10 = tpu.concatenate %2, %3, %4, %5, %6, %7, %8, %9 in 1 : vector<17x16xf32>, vector<17x16xf32>, vector<17x16xf32>, vector<17x16xf32>, vector<17x16xf32>, vector<17x16xf32>, vector<17x16xf32>, vector<17x16xf32> -> vector<17x128xf32>
    %c0_3 = arith.constant 0 : index
    %c0_4 = arith.constant 0 : index
    %11 = vector.load %arg3[%c0_3, %c0_4] : memref<128x256xf32, #tpu.memory_space<vmem>>, vector<128x256xf32>
    %cst = arith.constant dense<0.000000e+00> : vector<17x256xf32>
    %12 = tpu.matmul %10, %11, %cst {dimension_numbers = #tpu.dot_dimension_numbers<[1], [0], [0], [1], [0, 0, 1, 1], [], []>} : vector<17x128xf32>, vector<128x256xf32>, vector<17x256xf32> -> vector<17x256xf32>
    %13 = vector.extract_strided_slice %12 {offsets = [0, 0], sizes = [16, 128], strides = [1, 1]} : vector<17x256xf32> to vector<16x128xf32>
    %14 = vector.extract_strided_slice %12 {offsets = [1, 128], sizes = [16, 128], strides = [1, 1]} : vector<17x256xf32> to vector<16x128xf32>
    %15 = tpu.concatenate %13, %14 in 1 : vector<16x128xf32>, vector<16x128xf32> -> vector<16x256xf32>
    %c0_5 = arith.constant 0 : index
    %c0_6 = arith.constant 0 : index
    %c0_7 = arith.constant 0 : index
    %16 = vector.load %arg4[%c0_5, %c0_6, %c0_7] : memref<1x16x256xf32, #tpu.memory_space<vmem>>, vector<1x16x256xf32>
    %17 = vector.shape_cast %16 : vector<1x16x256xf32> to vector<16x256xf32>
    %18 = vector.shape_cast %15 : vector<16x256xf32> to vector<1x16x256xf32>
    tpu.vector_store %arg4[%c0_5, %c0_6, %c0_7], %18 {strides = array<i32>} : memref<1x16x256xf32, #tpu.memory_space<vmem>>, vector<1x16x256xf32>,
    %cst_8 = arith.constant dense<0.000000e+00> : vector<256xf32>
    %19 = vector.multi_reduction <add>, %15, %cst_8 [0] : vector<16x256xf32> to vector<256xf32>
    %20 = vector.shape_cast %19 : vector<256xf32> to vector<1x256xf32>
    %21 = arith.mulf %15, %15 : vector<16x256xf32>
    %cst_9 = arith.constant dense<0.000000e+00> : vector<256xf32>
    %22 = vector.multi_reduction <add>, %21, %cst_9 [0] : vector<16x256xf32> to vector<256xf32>
    %23 = vector.shape_cast %22 : vector<256xf32> to vector<1x256xf32>
    %24 = tpu.concatenate %20, %23 in 0 : vector<1x256xf32>, vector<1x256xf32> -> vector<2x256xf32>
    %c0_10 = arith.constant 0 : index
    %c0_11 = arith.constant 0 : index
    %c0_12 = arith.constant 0 : index
    %c0_13 = arith.constant 0 : index
    %25 = vector.load %arg5[%c0_10, %c0_11, %c0_12, %c0_13] : memref<1x1x2x256xf32, #tpu.memory_space<vmem>>, vector<1x1x2x256xf32>
    %26 = vector.shape_cast %25 : vector<1x1x2x256xf32> to vector<2x256xf32>
    %27 = vector.shape_cast %24 : vector<2x256xf32> to vector<1x1x2x256xf32>
    tpu.vector_store %arg5[%c0_10, %c0_11, %c0_12, %c0_13], %27 {strides = array<i32>} : memref<1x1x2x256xf32, #tpu.memory_space<vmem>>, vector<1x1x2x256xf32>,
    return
  }
  func.func @transform_0(%arg0: i32, %arg1: i32) -> (i32, i32, i32, i32) {
    %c0_i32 = arith.constant 0 : i32
    %c0_i32_0 = arith.constant 0 : i32
    %c0_i32_1 = arith.constant 0 : i32
    return %arg0, %arg1, %c0_i32, %c0_i32_0 : i32, i32, i32, i32
  }
  func.func @transform_1(%arg0: i32, %arg1: i32) -> (i32, i32) {
    %c0_i32 = arith.constant 0 : i32
    %c0_i32_0 = arith.constant 0 : i32
    %c0_i32_1 = arith.constant 0 : i32
    return %c0_i32, %c0_i32_0 : i32, i32
  }
  func.func @transform_2(%arg0: i32, %arg1: i32) -> (i32, i32, i32) {
    %c0_i32 = arith.constant 0 : i32
    %c0_i32_0 = arith.constant 0 : i32
    return %arg0, %arg1, %c0_i32 : i32, i32, i32
  }
  func.func @transform_3(%arg0: i32, %arg1: i32) -> (i32, i32, i32, i32) {
    %c0_i32 = arith.constant 0 : i32
    %c0_i32_0 = arith.constant 0 : i32
    %c0_i32_1 = arith.constant 0 : i32
    return %arg0, %arg1, %c0_i32, %c0_i32_0 : i32, i32, i32, i32
  }
}

</mosaic_0001>

<bundles_post_ra>
// kernel: upsample_batchnorm.1
= control target key start
LH: loop header
LB: loop body
LE: loop exit
PB: predicated region body
PF: predicated region fallthrough
CT: control target
= control target key end

     0   :  { %s873_s12 = smov 0   ;;  %s875_s13 = smov 0   ;;  %s1110_s0 = inlined_call_operand.vmem [shape: f32[2,1,24,16], index: 0, kind: input, shape index: {}]   ;;  %s1111_s1 = inlined_call_operand.vmem [shape: f32[128,256], index: 1, kind: input, shape index: {}]   ;;  %s1112_s2 = inlined_call_operand.vmem [shape: f32[2,16,256], index: 2, kind: output, shape index: {0}]   ;;  %s1113_s3 = inlined_call_operand.vmem [shape: f32[2,1,2,256], index: 3, kind: output, shape index: {1}]  }
   0x1   :  { %s877_s14 = smov 0  }
   0x2 LB: > { %s26_s15 = sadd.s32 1, %s839_s13  ;;  %p710_p0 = scmp.ge.s32.totalorder %s843_s14, 1  ;;  %s843_s14 = sphi %s877_s14, %s14_s14   ;;  %s839_s13 = sphi %s875_s13, %s1115_s13   ;;  %s835_s12 = sphi %s873_s12, %s1114_s12  }
   0x3   : > { %p28_p1 = scmp.ge.s32.totalorder %s26_s15, 2  ;;  %p162_p2 = scmp.lt.s32.totalorder %s843_s14, 3 }
   0x5   : > { %s1117_s15 = smov (%p28_p1, %s26_s15), 0  ;;  %p163_p3 = pnand %p710_p0, %p162_p2 }
   0x6   : > { %p204_p4 = scmp.lt.s32.totalorder (!%p163_p3), %s835_s12, 1  ;;  %s845_s19 = smov (!%p163_p3), 16  }
   0x7   : > { %166 = sbr.rel (%p163_p3) target bundleno = 384 (0x180), region = 28  ;;  %s847_s8 = smov (!%p163_p3), 64  }
   0x8   : > { %s848_s11 = smov (!%p163_p3), 32   ;;  %s849_s20 = smov (!%p163_p3), 80  }
   0x9   : > { %s850_s28 = smov (!%p163_p3), 96   ;;  %s851_s9 = smov (!%p163_p3), 112  }
   0xc   : > { %v403_v0 = vld [vmem:[%s1111_s1 + $0xf8] sm:$0xff]  ;;  %s1119_s12 = smov (!%p204_p4, %s835_s12), 1  ;;  %v402_v1 = vld [vmem:[%s1111_s1 + $0xf0] sm:$0xff]  ;;  %v401_v2 = vld [vmem:[%s1111_s1 + $0xe8] sm:$0xff]  ;;  %vm269_vm0 = vcmask 1042432   ;;  %vm239_vm1 = vcmask 1040384  }
   0xd   : > { %721 = vmatprep.subr.mxu1 %v403_v0  ;;  %v400_v3 = vld [vmem:[%s1111_s1 + $0xe0] sm:$0xff]  ;;  %415 = vmatprep.subr.mxu0 %v403_v0  ;;  %v399_v4 = vld [vmem:[%s1111_s1 + $0xd8] sm:$0xff]  ;;  %s753_s26 = smul.u32 24, %s1119_s12  ;;  %v398_v5 = vld [vmem:[%s1111_s1 + $0xd0] sm:$0xff]  ;;  %vm284_vm2 = vcmask 1043456   ;;  %vm254_vm3 = vcmask 1041408  }
   0xe   : > { %737 = vmatpush1.msra.mxu1 %v402_v1  ;;  %416 = vmatpush1.msra.mxu0 %v402_v1  ;;  %v397_v6 = vld [vmem:[%s1111_s1 + $0xc8] sm:$0xff]  ;;  %v396_v7 = vld [vmem:[%s1111_s1 + $0xc0] sm:$0xff]  ;;  %v395_v8 = vld [vmem:[%s1111_s1 + $0xb8] sm:$0xff]  ;;  %vm299_vm4 = vcmask 1044480   ;;  %vm314_vm5 = vcmask 1045504   ;;  %vm329_vm6 = vcmask 1046528  }
   0xf   : > { %722 = vmatprep.subr.mxu1 %v401_v2  ;;  %417 = vmatprep.subr.mxu0 %v401_v2  ;;  %s212_s6 = scalar_lea.vmem %s1110_s0, %s753_s26  ;;  %v394_v16 = vld [vmem:[%s1111_s1 + $0xb0] sm:$0xff]  ;;  %v393_v21 = vld [vmem:[%s1111_s1 + $0xa8] sm:$0xff]  ;;  %v392_v26 = vld [vmem:[%s1111_s1 + $0xa0] sm:$0xff]  ;;  %s846_s26 = smov 48   ;;  %vm344_vm7 = vcmask 130048   ;;  %vm348_vm8 = vcmask 261120  }
  0x10   : > { %738 = vmatpush1.msra.mxu1 %v400_v3  ;;  %418 = vmatpush1.msra.mxu0 %v400_v3  ;;  %v924_v9 = vld [vmem:[%s212_s6] sm:$0xff]  ;;  %v926_v10 = vld [vmem:[%s212_s6 + $0x8] sm:$0xff]  ;;  %v928_v11 = vld [vmem:[%s212_s6 + $0x10] sm:$0xff]  ;;  %vm352_vm9 = vcmask 392192   ;;  %vm356_vm10 = vcmask 523264   ;;  %vm360_vm11 = vcmask 654336  }
  0x11   : > { %723 = vmatprep.subr.mxu1 %v399_v4  ;;  %419 = vmatprep.subr.mxu0 %v399_v4  ;;  %v240_v12 = vrot.slane %v924_v9, 7  ;;  %v270_v13 = vrot.slane %v924_v9, 5  ;;  %v271_v14 = vrot.slane %v926_v10, 5  ;;  %v273_v15 = vrot.slane %v928_v11, 5  ;;  %v391_v31 = vld [vmem:[%s1111_s1 + $0x98] sm:$0xff]  ;;  %v390_v36 = vld [vmem:[%s1111_s1 + $0x90] sm:$0xff] }
  0x12   : > { %739 = vmatpush1.msra.mxu1 %v398_v5  ;;  %420 = vmatpush1.msra.mxu0 %v398_v5  ;;  %v241_v17 = vrot.slane %v926_v10, 7  ;;  %v243_v18 = vrot.slane %v928_v11, 7  ;;  %v285_v19 = vrot.slane %v924_v9, 4  ;;  %v286_v20 = vrot.slane %v926_v10, 4  ;;  %v389_v41 = vld [vmem:[%s1111_s1 + $0x88] sm:$0xff]  ;;  %v388_v46 = vld [vmem:[%s1111_s1 + $0x80] sm:$0xff] }
  0x13   : > { %724 = vmatprep.subr.mxu1 %v397_v6  ;;  %421 = vmatprep.subr.mxu0 %v397_v6  ;;  %v272_v22 = vsel %vm269_vm0, %v270_v13, %v271_v14  ;;  %v274_v23 = vsel %vm269_vm0, %v271_v14, %v273_v15  ;;  %v288_v24 = vrot.slane %v928_v11, 4  ;;  %v255_v25 = vrot.slane %v924_v9, 6  ;;  %v387_v51 = vld [vmem:[%s1111_s1 + $0x78] sm:$0xff]  ;;  %v386_v52 = vld [vmem:[%s1111_s1 + $0x70] sm:$0xff]  ;;  %v385_v55 = vld [vmem:[%s1111_s1 + $0x68] sm:$0xff]  ;;  %s720_s27 = sshll.u32 %s1119_s12, 2 }
  0x14   : > { %740 = vmatpush1.msra.mxu1 %v396_v7  ;;  %422 = vmatpush1.msra.mxu0 %v396_v7  ;;  %v796_v27 = vpack.i.bf16 %v274_v23, %v272_v22  ;;  %v242_v28 = vsel %vm239_vm1, %v240_v12, %v241_v17  ;;  %v244_v29 = vsel %vm239_vm1, %v241_v17, %v243_v18  ;;  %v256_v34 = vrot.slane %v926_v10, 6  ;;  %v384_v60 = vld [vmem:[%s1111_s1 + $0x60] sm:$0xff]  ;;  %v383_v61 = vld [vmem:[%s1111_s1 + $0x58] sm:$0xff]  ;;  %v382_v63 = vld [vmem:[%s1111_s1 + $0x50] sm:$0xff]  ;;  %s232_s30 = scalar_lea.vmem %s1113_s3, %s720_s27 }
  0x15   : > { %245 = vrot.lane.b32.xlu0 %v240_v12, %s845_s19  ;;  %725 = vmatprep.subr.mxu1 %v395_v8  ;;  %v287_v30 = vsel %vm284_vm2, %v285_v19, %v286_v20  ;;  %v786_v32 = vpack.i.bf16 %v244_v29, %v242_v28  ;;  %v289_v33 = vsel %vm284_vm2, %v286_v20, %v288_v24  ;;  %v258_v35 = vrot.slane %v928_v11, 6  ;;  %v381_v2 = vld [vmem:[%s1111_s1 + $0x48] sm:$0xff]  ;;  %v380_v3 = vld [vmem:[%s1111_s1 + $0x40] sm:$0xff]  ;;  %v379_v5 = vld [vmem:[%s1111_s1 + $0x38] sm:$0xff] }
  0x16   : > { %741 = vmatpush1.msra.mxu1 %v394_v16  ;;  %423 = vmatprep.subr.mxu0 %v395_v8  ;;  %v801_v37 = vpack.i.bf16 %v289_v33, %v287_v30  ;;  %v300_v38 = vrot.slane %v924_v9, 3  ;;  %v301_v39 = vrot.slane %v926_v10, 3  ;;  %v303_v40 = vrot.slane %v928_v11, 3  ;;  %v378_v6 = vld [vmem:[%s1111_s1 + $0x30] sm:$0xff]  ;;  %v377_v7 = vld [vmem:[%s1111_s1 + $0x28] sm:$0xff]  ;;  %v376_v8 = vld [vmem:[%s1111_s1 + $0x20] sm:$0xff] }
  0x17   : > { %726 = vmatprep.subr.mxu1 %v393_v21  ;;  %797 = vrot.lane.b32.xlu1 %v796_v27, %s846_s26  ;;  %v257_v42 = vsel %vm254_vm3, %v255_v25, %v256_v34  ;;  %v259_v43 = vsel %vm254_vm3, %v256_v34, %v258_v35  ;;  %v315_v44 = vrot.slane %v924_v9, 2  ;;  %v316_v45 = vrot.slane %v926_v10, 2  ;;  %v375_v12 = vld [vmem:[%s1111_s1 + $0x18] sm:$0xff]  ;;  %v373_v14 = vld [vmem:[%s1111_s1 + $0x8] sm:$0xff]  ;;  %v372_v15 = vld [vmem:[%s1111_s1] sm:$0xff] }
  0x18   : > { %742 = vmatpush1.msra.mxu1 %v392_v26  ;;  %v791_v47 = vpack.i.bf16 %v259_v43, %v257_v42  ;;  %v302_v48 = vsel %vm299_vm4, %v300_v38, %v301_v39  ;;  %v304_v49 = vsel %vm299_vm4, %v301_v39, %v303_v40  ;;  %v318_v50 = vrot.slane %v928_v11, 2  ;;  %424 = vmatpush1.msra.mxu0 %v394_v16 }
  0x19   : > { %787 = vrot.lane.b32.xlu0 %v786_v32, %s845_s19  ;;  %727 = vmatprep.subr.mxu1 %v391_v31  ;;  %v806_v53 = vpack.i.bf16 %v304_v49, %v302_v48  ;;  %v317_v54 = vsel %vm314_vm5, %v315_v44, %v316_v45  ;;  %v330_v57 = vrot.slane %v924_v9, 1  ;;  %v331_v58 = vrot.slane %v926_v10, 1 }
  0x1a   : > { %743 = vmatpush1.msra.mxu1 %v390_v36  ;;  %425 = vmatprep.subr.mxu0 %v393_v21  ;;  %v319_v56 = vsel %vm314_vm5, %v316_v45, %v318_v50  ;;  %v333_v59 = vrot.slane %v928_v11, 1  ;;  %v852_v16 = vmov 0.0   ;;  %vm364_vm12 = vcmask 785408  }
  0x1b   : > { %728 = vmatprep.subr.mxu1 %v389_v41  ;;  %802 = vrot.lane.b32.xlu1 %v801_v37, %s847_s8  ;;  %v811_v62 = vpack.i.bf16 %v319_v56, %v317_v54  ;;  %v332_v0 = vsel %vm329_vm6, %v330_v57, %v331_v58  ;;  %vm368_vm13 = vcmask 916480  }
  0x1c   : > { %744 = vmatpush1.msra.mxu1 %v388_v46  ;;  %426 = vmatpush1.msra.mxu0 %v392_v26  ;;  %v334_v1 = vsel %vm329_vm6, %v331_v58, %v333_v59 }
  0x1d   : > { %792 = vrot.lane.b32.xlu0 %v791_v47, %s848_s11  ;;  %729 = vmatprep.subr.mxu1 %v387_v51  ;;  %v816_v4 = vpack.i.bf16 %v334_v1, %v332_v0 }
  0x1e   : > { %745 = vmatpush1.msra.mxu1 %v386_v52  ;;  %427 = vmatprep.subr.mxu0 %v391_v31 }
  0x1f   : > { %730 = vmatprep.subr.mxu1 %v385_v55  ;;  %807 = vrot.lane.b32.xlu1 %v806_v53, %s849_s20 }
  0x20   : > { %428 = vmatpush1.msra.mxu0 %v390_v36  ;;  %746 = vmatpush1.msra.mxu1 %v384_v60 }
  0x21   : > { %260 = vrot.lane.b32.xlu0 %v255_v25, %s848_s11  ;;  %429 = vmatprep.subr.mxu0 %v389_v41 }
  0x22   : > { %731 = vmatprep.subr.mxu1 %v383_v61  ;;  %430 = vmatpush1.msra.mxu0 %v388_v46 }
  0x23   : > { %747 = vmatpush1.msra.mxu1 %v382_v63  ;;  %812 = vrot.lane.b32.xlu1 %v811_v62, %s850_s28 }
  0x24   : > { %431 = vmatprep.subr.mxu0 %v387_v51  ;;  %732 = vmatprep.subr.mxu1 %v381_v2 }
  0x25   : > { %275 = vrot.lane.b32.xlu0 %v270_v13, %s846_s26  ;;  %432 = vmatpush1.msra.mxu0 %v386_v52  ;;  %v374_v13 = vld [vmem:[%s1111_s1 + $0x10] sm:$0xff] }
  0x26   : > { %748 = vmatpush1.msra.mxu1 %v380_v3  ;;  %433 = vmatprep.subr.mxu0 %v385_v55 }
  0x27   : > { %733 = vmatprep.subr.mxu1 %v379_v5  ;;  %817 = vrot.lane.b32.xlu1 %v816_v4, %s851_s9 }
  0x28   : > { %434 = vmatpush1.msra.mxu0 %v384_v60  ;;  %749 = vmatpush1.msra.mxu1 %v378_v6 }
  0x29   : > { %290 = vrot.lane.b32.xlu0 %v285_v19, %s847_s8  ;;  %435 = vmatprep.subr.mxu0 %v383_v61 }
  0x2a   : > { %734 = vmatprep.subr.mxu1 %v377_v7  ;;  %436 = vmatpush1.msra.mxu0 %v382_v63 }
  0x2b   : > { %750 = vmatpush1.msra.mxu1 %v376_v8  ;;  %305 = vrot.lane.b32.xlu1 %v300_v38, %s849_s20  ;;  %s719_s20 = sshll.u32 %s1119_s12, 5 }
  0x2c   : > { %437 = vmatprep.subr.mxu0 %v381_v2  ;;  %735 = vmatprep.subr.mxu1 %v375_v12  ;;  %s222_s25 = scalar_lea.vmem %s1112_s2, %s719_s20 }
  0x2d   : > { %320 = vrot.lane.b32.xlu0 %v315_v44, %s850_s28  ;;  %438 = vmatpush1.msra.mxu0 %v380_v3 }
  0x2e   : > { %751 = vmatpush1.msra.mxu1 %v374_v13  ;;  %439 = vmatprep.subr.mxu0 %v379_v5 }
  0x2f   : > { %736 = vmatprep.subr.mxu1 %v373_v14  ;;  %335 = vrot.lane.b32.xlu1 %v330_v57, %s851_s9 }
  0x30   : > { %440 = vmatpush1.msra.mxu0 %v378_v6  ;;  %752 = vmatpush1.msra.mxu1 %v372_v15 }
  0x31   : > { %485 = vmatprep.mubr.f32.mxu1 %v852_v16  ;;  %441 = vmatprep.subr.mxu0 %v377_v7 }
  0x32   : > { %479 = vmatprep.mubr.f32.mxu0 %v852_v16  ;;  %442 = vmatpush1.msra.mxu0 %v376_v8 }
  0x33   : > { %443 = vmatprep.subr.mxu0 %v375_v12 }
  0x34   : > { %444 = vmatpush1.msra.mxu0 %v374_v13 }
  0x35   : > { %445 = vmatprep.subr.mxu0 %v373_v14 }
  0x36   : > { %446 = vmatpush1.msra.mxu0 %v372_v15 }
  0x87   : > { %v246_v17 = vpop.permute.xlu0 %245 }
  0x88   : > { %v345_v44 = vsel %vm344_vm7, %v924_v9, %v246_v17 }
  0x89   : > { %v798_v18 = vpop.permute.xlu1 %797 }
  0x8a   : > { %v800_v31 = vunpack.i.h.bf16 %v798_v18  ;;  %v799_v32 = vunpack.i.l.bf16 %v798_v18 }
  0x8b   : > { %v788_v19 = vpop.permute.xlu0 %787 }
  0x8c   : > { %v790_v20 = vunpack.i.h.bf16 %v788_v19  ;;  %v789_v21 = vunpack.i.l.bf16 %v788_v19 }
  0x8d   : > { %v803_v22 = vpop.permute.xlu1 %802 }
  0x8e   : > { %v347_v23 = vsel %vm344_vm7, %v928_v11, %v790_v20  ;;  %v346_v24 = vsel %vm344_vm7, %v926_v10, %v789_v21  ;;  %v805_v35 = vunpack.i.h.bf16 %v803_v22  ;;  %v804_v10 = vunpack.i.l.bf16 %v803_v22 }
  0x8f   : > { %v793_v25 = vpop.permute.xlu0 %792 }
  0x90   : > { %v795_v26 = vunpack.i.h.bf16 %v793_v25  ;;  %v794_v27 = vunpack.i.l.bf16 %v793_v25 }
  0x91   : > { %v808_v28 = vpop.permute.xlu1 %807 }
  0x92   : > { %v350_v29 = vsel %vm348_vm8, %v346_v24, %v794_v27  ;;  %v351_v30 = vsel %vm348_vm8, %v347_v23, %v795_v26  ;;  %v810_v37 = vunpack.i.h.bf16 %v808_v28  ;;  %v809_v38 = vunpack.i.l.bf16 %v808_v28 }
  0x93   : > { %v261_v33 = vpop.permute.xlu0 %260  ;;  %v354_v34 = vsel %vm352_vm9, %v350_v29, %v799_v32  ;;  %v355_v11 = vsel %vm352_vm9, %v351_v30, %v800_v31 }
  0x94   : > { %v358_v42 = vsel %vm356_vm10, %v354_v34, %v804_v10  ;;  %v359_v43 = vsel %vm356_vm10, %v355_v11, %v805_v35  ;;  %v349_v51 = vsel %vm348_vm8, %v345_v44, %v261_v33 }
  0x95   : > { %v813_v36 = vpop.permute.xlu1 %812  ;;  %v362_v49 = vsel %vm360_vm11, %v358_v42, %v809_v38  ;;  %v363_v50 = vsel %vm360_vm11, %v359_v43, %v810_v37 }
  0x96   : > { %v815_v40 = vunpack.i.h.bf16 %v813_v36  ;;  %v814_v41 = vunpack.i.l.bf16 %v813_v36 }
  0x97   : > { %v276_v39 = vpop.permute.xlu0 %275 }
  0x98   : > { %v366_v52 = vsel %vm364_vm12, %v362_v49, %v814_v41  ;;  %v367_v53 = vsel %vm364_vm12, %v363_v50, %v815_v40  ;;  %v353_v54 = vsel %vm352_vm9, %v349_v51, %v276_v39 }
  0x99   : > { %v818_v45 = vpop.permute.xlu1 %817 }
  0x9a   : > { %v820_v46 = vunpack.i.h.bf16 %v818_v45  ;;  %v819_v47 = vunpack.i.l.bf16 %v818_v45 }
  0x9b   : > { %v291_v48 = vpop.permute.xlu0 %290 }
  0x9c   : > { %v370_v55 = vsel %vm368_vm13, %v366_v52, %v819_v47  ;;  %v371_v9 = vsel %vm368_vm13, %v367_v53, %v820_v46  ;;  %v357_v56 = vsel %vm356_vm10, %v353_v54, %v291_v48 }
  0x9d   : > { %v306_v57 = vpop.permute.xlu1 %305  ;;  %v408_v58 = vrot.slane %v370_v55, 7  ;;  %v410_v59 = vrot.slane %v371_v9, 7 }
  0x9e   : > { %v361_v60 = vsel %vm360_vm11, %v357_v56, %v306_v57 }
  0x9f   : > { %v321_v61 = vpop.permute.xlu0 %320  ;;  %v411_v62 = vsel %vm239_vm1, %v408_v58, %v410_v59 }
  0xa0   : > { %486 = vmatmul.mubr.f32.vlgmr.msra.gmra.mxu1 %v411_v62  ;;  %v365_v63 = vsel %vm364_vm12, %v361_v60, %v321_v61 }
  0xa1   : > { %v336_v0 = vpop.permute.xlu1 %335  ;;  %491 = vmatprep.mubr.f32.mxu1 %v852_v16 }
  0xa2   : > { %v369_v1 = vsel %vm368_vm13, %v365_v63, %v336_v0 }
  0xa3   : > { %v407_v2 = vrot.slane %v369_v1, 7 }
  0xa4   : > { %492 = vmatmul.mubr.f32.gmra.mxu1 %v410_v59 }
  0xa5   : > { %v409_v3 = vsel %vm239_vm1, %v407_v2, %v408_v58 }
  0xa6   : > { %480 = vmatmul.mubr.f32.vlgmr.msra.gmra.mxu0 %v409_v3 }
 0x160   : > { %v487_v4 = vpop.f32.mrf.mxu1 }
 0x161   : > { %509 = vst [vmem:[%s222_s25 + $0x10] sm:$0xff] %v487_v4  ;;  %v527_v7 = vmul.f32 %v487_v4, %v487_v4 }
 0x162   : > { %v489_v5 = vpop.f32.mrf.mxu1 }
 0x163   : > { %v501_v13 = vrot.slane %v489_v5, 1 }
 0x164   : > { %v493_v6 = vpop.f32.mrf.mxu1 }
 0x166   : > { %v481_v8 = vpop.f32.mrf.mxu0  ;;  %v494_v12 = vpop.f32.mrf.mxu1 }
 0x167   : > { %507 = vst [vmem:[%s222_s25] sm:$0xff] %v481_v8  ;;  %v511_v14 = vadd.f32 %v487_v4, %v481_v8  ;;  %v525_v15 = vmul.f32 %v481_v8, %v481_v8  ;;  %v503_v16 = vrot.slane %v494_v12, 1 }
 0x168   : > { %v483_v17 = vpop.f32.mrf.mxu0 }
 0x169   : > { %v512_v18 = vrot.slane %v511_v14, 4  ;;  %v529_v19 = vadd.f32 %v527_v7, %v525_v15  ;;  %v504_v20 = vsel %vm329_vm6, %v501_v13, %v503_v16  ;;  %v500_v21 = vrot.slane %v483_v17, 1 }
 0x16a   : > { %510 = vst [vmem:[%s222_s25 + $0x18] sm:$0xff] %v504_v20  ;;  %v528_v25 = vmul.f32 %v504_v20, %v504_v20 }
 0x16b   : > { %v513_v22 = vadd.f32 %v512_v18, %v511_v14  ;;  %v530_v23 = vrot.slane %v529_v19, 4  ;;  %v502_v24 = vsel %vm329_vm6, %v500_v21, %v501_v13 }
 0x16c   : > { %508 = vst [vmem:[%s222_s25 + $0x8] sm:$0xff] %v502_v24  ;;  %v518_v26 = vadd.f32 %v504_v20, %v502_v24  ;;  %v526_v27 = vmul.f32 %v502_v24, %v502_v24 }
 0x16d   : > { %v531_v28 = vadd.f32 %v530_v23, %v529_v19  ;;  %v514_v29 = vrot.slane %v513_v22, 2 }
 0x16e   : > { %v519_v30 = vrot.slane %v518_v26, 4  ;;  %v536_v31 = vadd.f32 %v528_v25, %v526_v27 }
 0x16f   : > { %v532_v32 = vrot.slane %v531_v28, 2  ;;  %v515_v35 = vadd.f32 %v514_v29, %v513_v22 }
 0x170   : > { %v520_v33 = vadd.f32 %v519_v30, %v518_v26  ;;  %v537_v34 = vrot.slane %v536_v31, 4 }
 0x171   : > { %v533_v11 = vadd.f32 %v532_v32, %v531_v28  ;;  %v516_v40 = vrot.slane %v515_v35, 1 }
 0x172   : > { %v521_v10 = vrot.slane %v520_v33, 2  ;;  %v538_v36 = vadd.f32 %v537_v34, %v536_v31 }
 0x173   : > { %v534_v37 = vrot.slane %v533_v11, 1  ;;  %v517_v45 = vadd.f32 %v516_v40, %v515_v35 }
 0x174   : > { %v522_v38 = vadd.f32 %v521_v10, %v520_v33  ;;  %v539_v39 = vrot.slane %v538_v36, 2 }
 0x175   : > { %v535_v43 = vadd.f32 %v534_v37, %v533_v11 }
 0x176   : > { %v523_v41 = vrot.slane %v522_v38, 1  ;;  %v540_v42 = vadd.f32 %v539_v39, %v538_v36 }
 0x177   : > { %v543_v48 = vsel %vm239_vm1, %v517_v45, %v535_v43 }
 0x178   : > { %v541_v44 = vrot.slane %v540_v42, 1  ;;  %v524_v46 = vadd.f32 %v523_v41, %v522_v38 }
 0x17a   : > { %v542_v47 = vadd.f32 %v541_v44, %v540_v42 }
 0x17c   : > { %v544_v49 = vsel %vm239_vm1, %v524_v46, %v542_v47 }
 0x17d   : > { %v547_v50 = vcombine.low %v543_v48, %v544_v49 }
 0x17f   : > { %716 = vst.sshfl [vmem:[%s232_s30] sm:$0x33 pattern:$0x76325410] %v547_v50 }
 0x180 PF: > { %s14_s14 = sadd.s32 1, %s843_s14   ;;  %s1114_s12 = smov %s839_s13 }
 0x181   : > { %p11_p5 = scmp.ge.s32.totalorder %s14_s14, 4   ;;  %s1115_s13 = smov %s1117_s15 }
 0x183   :  { %13 = sbr.rel (!%p11_p5) target bundleno = 2 (0x2), region = 70 }

</bundles_post_ra>
